<compile_context>
chip_gen: v5e
topology: v5e:2x2
jax: 0.10.0
libtpu: 0.0.40
codegen_flags: <defaults>
</compile_context>

<pallas_src>
import numpy as np
import jax
import jax.numpy as jnp
from jax.experimental import pallas as pl
from jax.experimental.pallas import tpu as pltpu


# --------------------------------------------------------------------------
# Kernel A: fused 1x1 conv + gaussian activation decode (channel-major)
# --------------------------------------------------------------------------
def _gaussian_decode_kernel(feat_ref, w_ref, b_ref, out_ref):
    x = feat_ref[...]                                          # (14, TN)
    y = jnp.dot(w_ref[...], x, preferred_element_type=jnp.float32) + b_ref[...]

    # pos: channels 0:3  -> clamp(-1, 1)
    out_ref[0:3, :] = jnp.clip(y[0:3, :], -1.0, 1.0)

    # opacity: channel 3 -> sigmoid (single-row exact divide)
    y_o = y[3:4, :]
    out_ref[3:4, :] = 1.0 / (1.0 + jnp.exp(-y_o))

    # scale: channels 4:7 -> 0.1 * softplus (numerically stable)
    y_s = y[4:7, :]
    out_ref[4:7, :] = 0.1 * (jnp.maximum(y_s, 0.0) +
                             jnp.log1p(jnp.exp(-jnp.abs(y_s))))

    # rotation: channels 7:11 -> F.normalize over the 4 channels (eps = 1e-12)
    y_r = y[7:11, :]
    ss = jnp.sum(y_r * y_r, axis=0, keepdims=True)             # (1, TN)
    inv_norm = 1.0 / jnp.maximum(jnp.sqrt(ss), 1e-12)          # exact, one row
    out_ref[7:11, :] = y_r * inv_norm

    # rgb: channels 11:14 -> 0.5 * tanh + 0.5
    out_ref[11:14, :] = 0.5 * jnp.tanh(y[11:14, :]) + 0.5


def gaussian_decode(feat_cm, conv_w, conv_b, *, tile_n=8192):
    """feat_cm: (B, 14, N) channel-major f32.  conv_w: (14, 14) [out, in].
    Returns gaussians in the module's (B, N, 14) layout."""
    B, C, N = feat_cm.shape
    assert C == 14 and N % 128 == 0
    tile_n = min(tile_n, N)
    assert N % tile_n == 0 and (tile_n % 128 == 0 or tile_n == N)
    b2 = conv_b.reshape(C, 1)

    out_cm = pl.pallas_call(
        _gaussian_decode_kernel,
        out_shape=jax.ShapeDtypeStruct((B, C, N), jnp.float32),
        grid=(B, N // tile_n),
        in_specs=[
            pl.BlockSpec((None, C, tile_n), lambda b, n: (b, 0, n)),
            pl.BlockSpec((C, C), lambda b, n: (0, 0)),
            pl.BlockSpec((C, 1), lambda b, n: (0, 0)),
        ],
        out_specs=pl.BlockSpec((None, C, tile_n), lambda b, n: (b, 0, n)),
        compiler_params=pltpu.CompilerParams(
            dimension_semantics=("parallel", "parallel"),
            vmem_limit_bytes=32 * 1024 * 1024),
    )(feat_cm, conv_w, b2)
    # Layout plumbing back to the module's (B, N, 14) gaussians layout.
    return jnp.swapaxes(out_cm, 1, 2)


# --------------------------------------------------------------------------
# Kernel B: background compositing + squared-error reductions (MSE / PSNR)
# --------------------------------------------------------------------------
def _loss_reduce_kernel(bg_ref, pred_ref, gt_ref, mask_ref, alpha_ref,
                        sse_img_ref, sse_alpha_ref, acc_img, acc_alpha):
    i = pl.program_id(0)          # view group
    c = pl.program_id(1)          # rgb channel

    @pl.when(jnp.logical_and(i == 0, c == 0))
    def _():
        acc_img[...] = jnp.zeros_like(acc_img)
        acc_alpha[...] = jnp.zeros_like(acc_alpha)

    m = mask_ref[...]                                  # (TV, P)
    bg_c = bg_ref[c]                                   # SMEM scalar
    d = pred_ref[...] - (gt_ref[...] * m + bg_c * (1.0 - m))
    acc_img[...] += d * d

    @pl.when(c == 0)
    def _():
        da = alpha_ref[...] - m
        acc_alpha[...] += da * da

    @pl.when(jnp.logical_and(i == pl.num_programs(0) - 1,
                             c == pl.num_programs(1) - 1))
    def _():
        sse_img_ref[0, 0] = jnp.sum(acc_img[...])
        sse_alpha_ref[0, 0] = jnp.sum(acc_alpha[...])


def loss_reduce(pred_images, gt_images, gt_masks, pred_alphas, bg_color):
    """pred/gt: (B,V,3,H,W); masks/alphas: (B,V,1,H,W); bg: (3,).
    Returns (sse_img, sse_alpha) as (1,1) f32 sums."""
    B, V, C, H, W = pred_images.shape
    assert C == 3
    BV, P = B * V, H * W
    assert P % 128 == 0
    # Free reshapes (no transposes): rows = views, lanes = channel-block|pixels.
    pred2 = pred_images.reshape(BV, C * P)
    gt2 = gt_images.reshape(BV, C * P)
    mask2 = gt_masks.reshape(BV, P)
    alpha2 = pred_alphas.reshape(BV, P)

    TV = 8 if BV % 8 == 0 else BV        # views per grid step (sublane-aligned)
    n_groups = BV // TV

    return pl.pallas_call(
        _loss_reduce_kernel,
        out_shape=(jax.ShapeDtypeStruct((1, 1), jnp.float32),
                   jax.ShapeDtypeStruct((1, 1), jnp.float32)),
        grid=(n_groups, C),
        in_specs=[
            pl.BlockSpec(memory_space=pltpu.MemorySpace.SMEM),   # bg (3,)
            pl.BlockSpec((TV, P), lambda i, c: (i, c)),          # pred
            pl.BlockSpec((TV, P), lambda i, c: (i, c)),          # gt
            pl.BlockSpec((TV, P), lambda i, c: (i, 0)),          # mask (resident over c)
            pl.BlockSpec((TV, P), lambda i, c: (i, 0)),          # alpha (resident over c)
        ],
        out_specs=(pl.BlockSpec(memory_space=pltpu.MemorySpace.SMEM),
                   pl.BlockSpec(memory_space=pltpu.MemorySpace.SMEM)),
        scratch_shapes=[pltpu.VMEM((TV, P), jnp.float32),
                        pltpu.VMEM((TV, P), jnp.float32)],
        compiler_params=pltpu.CompilerParams(
            dimension_semantics=("arbitrary", "arbitrary"),
            vmem_limit_bytes=32 * 1024 * 1024),
    )(bg_color, pred2, gt2, mask2, alpha2)


if __name__ == "__main__":
    key = jax.random.PRNGKey(0)
    B, V_in, C_in = 2, 4, 9
    input_size = 16
    splat_size = 16
    V_out, out_size = 4, 32

    (k_img, k_feat, k_w, k_b,
     k_pred, k_gt, k_mask, k_alpha) = jax.random.split(key, 8)

    # Module input images (B, V, 9, H, W) — consumed by the UNet backbone.
    images = jax.random.normal(k_img, (B, V_in, C_in, input_size, input_size),
                               jnp.float32)
    # TODO(synk): UNet backbone (core.unet.UNet) is an external module not defined
    # in the given code; we consume its (B*V, 14, splat, splat) output directly.
    unet_feat_nchw = jax.random.normal(
        k_feat, (B * V_in, 14, splat_size, splat_size), jnp.float32)

    # Deterministic params for nn.Conv2d(14, 14, kernel_size=1).
    conv_w = jax.random.normal(k_w, (14, 14), jnp.float32) / jnp.sqrt(14.0)
    conv_b = jax.random.normal(k_b, (14,), jnp.float32) * 0.1

    N = V_in * splat_size * splat_size
    # NCHW -> channel-major (B, 14, N) for the lane-dense decode kernel.
    feat_cm = unet_feat_nchw.reshape(B, V_in, 14, splat_size, splat_size) \
                            .transpose(0, 2, 1, 3, 4).reshape(B, 14, N)

    gaussians = jax.block_until_ready(gaussian_decode(feat_cm, conv_w, conv_b))

    # --- pure-JAX reference for the gaussian decode ------------------------
    feat_cl = unet_feat_nchw.reshape(B, V_in, 14, splat_size, splat_size) \
                            .transpose(0, 1, 3, 4, 2).reshape(B, N, 14)
    y = feat_cl @ conv_w.T + conv_b
    pos = jnp.clip(y[..., 0:3], -1, 1)
    opa = jax.nn.sigmoid(y[..., 3:4])
    scl = 0.1 * jax.nn.softplus(y[..., 4:7])
    rot = y[..., 7:11]
    rot = rot / jnp.maximum(jnp.linalg.norm(rot, axis=-1, keepdims=True), 1e-12)
    rgb = 0.5 * jnp.tanh(y[..., 11:]) + 0.5
    ref_g = jnp.concatenate([pos, opa, scl, rot, rgb], axis=-1)
    assert np.allclose(np.asarray(gaussians), np.asarray(ref_g),
                       atol=1e-4, rtol=1e-4)

    # TODO(synk): GaussianRenderer (diff-gaussian-rasterization splatting) has no
    # clean Pallas equivalent; stand-in rendered images/alphas supplied as inputs.
    pred_images = jax.random.uniform(
        k_pred, (B, V_out, 3, out_size, out_size), jnp.float32)
    gt_images = jax.random.uniform(
        k_gt, (B, V_out, 3, out_size, out_size), jnp.float32)
    gt_masks = (jax.random.uniform(
        k_mask, (B, V_out, 1, out_size, out_size), jnp.float32) > 0.5
                ).astype(jnp.float32)
    pred_alphas = jax.random.uniform(
        k_alpha, (B, V_out, 1, out_size, out_size), jnp.float32)
    bg_color = jnp.ones((3,), jnp.float32)

    sse_img, sse_alpha = loss_reduce(
        pred_images, gt_images, gt_masks, pred_alphas, bg_color)
    sse_img = jax.block_until_ready(sse_img)[0, 0]
    sse_alpha = sse_alpha[0, 0]

    P = out_size * out_size
    mse_img = sse_img / (B * V_out * 3 * P)
    mse_alpha = sse_alpha / (B * V_out * 1 * P)
    loss = mse_img + mse_alpha                 # loss_mse
    psnr = -10.0 * jnp.log10(mse_img)          # PSNR vs composited gt
    # TODO(synk): LPIPS(net='vgg') perceptual loss requires pretrained VGG
    # weights; omitted (equivalent to opt.lambda_lpips == 0).

    # --- pure-JAX reference for the loss reduction -------------------------
    gt_comp_ref = gt_images * gt_masks + bg_color.reshape(1, 1, 3, 1, 1) * (1 - gt_masks)
    mse_img_ref = jnp.mean((pred_images - gt_comp_ref) ** 2)
    mse_alpha_ref = jnp.mean((pred_alphas - gt_masks) ** 2)
    assert np.allclose(float(mse_img), float(mse_img_ref), atol=1e-5, rtol=1e-5)
    assert np.allclose(float(mse_alpha), float(mse_alpha_ref), atol=1e-5, rtol=1e-5)

    jax.block_until_ready((gaussians, loss, psnr))
    print("KERNEL_OK")
</pallas_src>

<mosaic_0001>
module attributes {stable_mosaic.version = 11 : i64} {
  func.func @_gaussian_decode_kernel(%arg0: i32, %arg1: i32, %arg2: memref<1x14x1024xf32, #tpu.memory_space<vmem>>, %arg3: memref<14x14xf32, #tpu.memory_space<vmem>>, %arg4: memref<14x1xf32, #tpu.memory_space<vmem>>, %arg5: memref<1x14x1024xf32, #tpu.memory_space<vmem>>) attributes {dimension_semantics = [#tpu.dimension_semantics<parallel>, #tpu.dimension_semantics<parallel>], iteration_bounds = array<i64: 2, 1>, scalar_prefetch = 0 : i64, scratch_operands = 0 : i64, tpu.core_type = #tpu.core_type<tc>, window_params = [{transform_indices = @transform_0, window_bounds = array<i64: 1, 14, 1024>}, {pipeline_mode = #tpu.pipeline_mode<synchronous>, transform_indices = @transform_1, window_bounds = array<i64: 14, 14>}, {pipeline_mode = #tpu.pipeline_mode<synchronous>, transform_indices = @transform_2, window_bounds = array<i64: 14, 1>}, {transform_indices = @transform_3, window_bounds = array<i64: 1, 14, 1024>}]} {
    %c0 = arith.constant 0 : index
    %c0_0 = arith.constant 0 : index
    %c0_1 = arith.constant 0 : index
    %0 = vector.load %arg2[%c0, %c0_0, %c0_1] : memref<1x14x1024xf32, #tpu.memory_space<vmem>>, vector<1x14x1024xf32>
    %1 = vector.shape_cast %0 : vector<1x14x1024xf32> to vector<14x1024xf32>
    %c0_2 = arith.constant 0 : index
    %c0_3 = arith.constant 0 : index
    %2 = vector.load %arg3[%c0_2, %c0_3] : memref<14x14xf32, #tpu.memory_space<vmem>>, vector<14x14xf32>
    %cst = arith.constant dense<0.000000e+00> : vector<14x1024xf32>
    %3 = tpu.matmul %2, %1, %cst {dimension_numbers = #tpu.dot_dimension_numbers<[1], [0], [0], [1], [0, 0, 1, 1], [], []>} : vector<14x14xf32>, vector<14x1024xf32>, vector<14x1024xf32> -> vector<14x1024xf32>
    %c0_4 = arith.constant 0 : index
    %c0_5 = arith.constant 0 : index
    %4 = vector.load %arg4[%c0_4, %c0_5] : memref<14x1xf32, #tpu.memory_space<vmem>>, vector<14x1xf32>
    %5 = vector.broadcast %4 : vector<14x1xf32> to vector<14x1024xf32>
    %6 = arith.addf %3, %5 : vector<14x1024xf32>
    %7 = vector.extract_strided_slice %6 {offsets = [0, 0], sizes = [3, 1024], strides = [1, 1]} : vector<14x1024xf32> to vector<3x1024xf32>
    %cst_6 = arith.constant -1.000000e+00 : f32
    %cst_7 = arith.constant 1.000000e+00 : f32
    %8 = vector.broadcast %cst_6 : f32 to vector<3x1024xf32>
    %9 = arith.maximumf %8, %7 : vector<3x1024xf32>
    %10 = vector.broadcast %cst_7 : f32 to vector<3x1024xf32>
    %11 = arith.minimumf %10, %9 : vector<3x1024xf32>
    %c0_8 = arith.constant 0 : index
    %c0_9 = arith.constant 0 : index
    %c0_10 = arith.constant 0 : index
    %12 = vector.load %arg5[%c0_8, %c0_9, %c0_10] : memref<1x14x1024xf32, #tpu.memory_space<vmem>>, vector<1x3x1024xf32>
    %13 = vector.shape_cast %12 : vector<1x3x1024xf32> to vector<3x1024xf32>
    %14 = vector.shape_cast %11 : vector<3x1024xf32> to vector<1x3x1024xf32>
    tpu.vector_store %arg5[%c0_8, %c0_9, %c0_10], %14 {strides = array<i32>} : memref<1x14x1024xf32, #tpu.memory_space<vmem>>, vector<1x3x1024xf32>,
    %15 = vector.extract_strided_slice %6 {offsets = [3, 0], sizes = [1, 1024], strides = [1, 1]} : vector<14x1024xf32> to vector<1x1024xf32>
    %cst_11 = arith.constant 0.000000e+00 : f32
    %16 = vector.broadcast %cst_11 : f32 to vector<1x1024xf32>
    %17 = arith.subf %16, %15 : vector<1x1024xf32>
    %18 = math.exp %17 : vector<1x1024xf32>
    %cst_12 = arith.constant 1.000000e+00 : f32
    %19 = vector.broadcast %cst_12 : f32 to vector<1x1024xf32>
    %20 = arith.addf %19, %18 : vector<1x1024xf32>
    %cst_13 = arith.constant 1.000000e+00 : f32
    %21 = vector.broadcast %cst_13 : f32 to vector<1x1024xf32>
    %22 = arith.divf %21, %20 : vector<1x1024xf32>
    %c0_14 = arith.constant 0 : index
    %c3 = arith.constant 3 : index
    %c0_15 = arith.constant 0 : index
    %23 = vector.load %arg5[%c0_14, %c3, %c0_15] : memref<1x14x1024xf32, #tpu.memory_space<vmem>>, vector<1x1x1024xf32>
    %24 = vector.shape_cast %23 : vector<1x1x1024xf32> to vector<1x1024xf32>
    %25 = vector.shape_cast %22 : vector<1x1024xf32> to vector<1x1x1024xf32>
    tpu.vector_store %arg5[%c0_14, %c3, %c0_15], %25 {strides = array<i32>} : memref<1x14x1024xf32, #tpu.memory_space<vmem>>, vector<1x1x1024xf32>,
    %26 = vector.extract_strided_slice %6 {offsets = [4, 0], sizes = [3, 1024], strides = [1, 1]} : vector<14x1024xf32> to vector<3x1024xf32>
    %cst_16 = arith.constant 0.000000e+00 : f32
    %27 = vector.broadcast %cst_16 : f32 to vector<3x1024xf32>
    %28 = arith.maximumf %26, %27 : vector<3x1024xf32>
    %29 = math.absf %26 : vector<3x1024xf32>
    %cst_17 = arith.constant 0.000000e+00 : f32
    %30 = vector.broadcast %cst_17 : f32 to vector<3x1024xf32>
    %31 = arith.subf %30, %29 : vector<3x1024xf32>
    %32 = math.exp %31 : vector<3x1024xf32>
    %33 = math.log1p %32 : vector<3x1024xf32>
    %34 = arith.addf %28, %33 : vector<3x1024xf32>
    %cst_18 = arith.constant 1.000000e-01 : f32
    %35 = vector.broadcast %cst_18 : f32 to vector<3x1024xf32>
    %36 = arith.mulf %35, %34 : vector<3x1024xf32>
    %c0_19 = arith.constant 0 : index
    %c4 = arith.constant 4 : index
    %c0_20 = arith.constant 0 : index
    %37 = vector.load %arg5[%c0_19, %c4, %c0_20] : memref<1x14x1024xf32, #tpu.memory_space<vmem>>, vector<1x3x1024xf32>
    %38 = vector.shape_cast %37 : vector<1x3x1024xf32> to vector<3x1024xf32>
    %39 = vector.shape_cast %36 : vector<3x1024xf32> to vector<1x3x1024xf32>
    tpu.vector_store %arg5[%c0_19, %c4, %c0_20], %39 {strides = array<i32>} : memref<1x14x1024xf32, #tpu.memory_space<vmem>>, vector<1x3x1024xf32>,
    %40 = vector.extract_strided_slice %6 {offsets = [7, 0], sizes = [4, 1024], strides = [1, 1]} : vector<14x1024xf32> to vector<4x1024xf32>
    %41 = arith.mulf %40, %40 : vector<4x1024xf32>
    %cst_21 = arith.constant dense<0.000000e+00> : vector<1024xf32>
    %42 = vector.multi_reduction <add>, %41, %cst_21 [0] : vector<4x1024xf32> to vector<1024xf32>
    %43 = vector.shape_cast %42 : vector<1024xf32> to vector<1x1024xf32>
    %44 = math.sqrt %43 : vector<1x1024xf32>
    %cst_22 = arith.constant 9.99999996E-13 : f32
    %45 = vector.broadcast %cst_22 : f32 to vector<1x1024xf32>
    %46 = arith.maximumf %44, %45 : vector<1x1024xf32>
    %cst_23 = arith.constant 1.000000e+00 : f32
    %47 = vector.broadcast %cst_23 : f32 to vector<1x1024xf32>
    %48 = arith.divf %47, %46 : vector<1x1024xf32>
    %49 = vector.broadcast %48 : vector<1x1024xf32> to vector<4x1024xf32>
    %50 = arith.mulf %40, %49 : vector<4x1024xf32>
    %c0_24 = arith.constant 0 : index
    %c7 = arith.constant 7 : index
    %c0_25 = arith.constant 0 : index
    %51 = vector.load %arg5[%c0_24, %c7, %c0_25] : memref<1x14x1024xf32, #tpu.memory_space<vmem>>, vector<1x4x1024xf32>
    %52 = vector.shape_cast %51 : vector<1x4x1024xf32> to vector<4x1024xf32>
    %53 = vector.shape_cast %50 : vector<4x1024xf32> to vector<1x4x1024xf32>
    tpu.vector_store %arg5[%c0_24, %c7, %c0_25], %53 {strides = array<i32>} : memref<1x14x1024xf32, #tpu.memory_space<vmem>>, vector<1x4x1024xf32>,
    %54 = vector.extract_strided_slice %6 {offsets = [11, 0], sizes = [3, 1024], strides = [1, 1]} : vector<14x1024xf32> to vector<3x1024xf32>
    %55 = math.tanh %54 : vector<3x1024xf32>
    %cst_26 = arith.constant 5.000000e-01 : f32
    %56 = vector.broadcast %cst_26 : f32 to vector<3x1024xf32>
    %57 = arith.mulf %56, %55 : vector<3x1024xf32>
    %cst_27 = arith.constant 5.000000e-01 : f32
    %58 = vector.broadcast %cst_27 : f32 to vector<3x1024xf32>
    %59 = arith.addf %57, %58 : vector<3x1024xf32>
    %c0_28 = arith.constant 0 : index
    %c11 = arith.constant 11 : index
    %c0_29 = arith.constant 0 : index
    %60 = vector.load %arg5[%c0_28, %c11, %c0_29] : memref<1x14x1024xf32, #tpu.memory_space<vmem>>, vector<1x3x1024xf32>
    %61 = vector.shape_cast %60 : vector<1x3x1024xf32> to vector<3x1024xf32>
    %62 = vector.shape_cast %59 : vector<3x1024xf32> to vector<1x3x1024xf32>
    tpu.vector_store %arg5[%c0_28, %c11, %c0_29], %62 {strides = array<i32>} : memref<1x14x1024xf32, #tpu.memory_space<vmem>>, vector<1x3x1024xf32>,
    return
  }
  func.func @transform_0(%arg0: i32, %arg1: i32) -> (i32, i32, i32) {
    %c0_i32 = arith.constant 0 : i32
    %c0_i32_0 = arith.constant 0 : i32
    return %arg0, %c0_i32, %arg1 : i32, i32, i32
  }
  func.func @transform_1(%arg0: i32, %arg1: i32) -> (i32, i32) {
    %c0_i32 = arith.constant 0 : i32
    %c0_i32_0 = arith.constant 0 : i32
    %c0_i32_1 = arith.constant 0 : i32
    return %c0_i32, %c0_i32_0 : i32, i32
  }
  func.func @transform_2(%arg0: i32, %arg1: i32) -> (i32, i32) {
    %c0_i32 = arith.constant 0 : i32
    %c0_i32_0 = arith.constant 0 : i32
    %c0_i32_1 = arith.constant 0 : i32
    return %c0_i32, %c0_i32_0 : i32, i32
  }
  func.func @transform_3(%arg0: i32, %arg1: i32) -> (i32, i32, i32) {
    %c0_i32 = arith.constant 0 : i32
    %c0_i32_0 = arith.constant 0 : i32
    return %arg0, %c0_i32, %arg1 : i32, i32, i32
  }
}

</mosaic_0001>

<bundles_post_ra>
// kernel: tpu_custom_call.1
= control target key start
LH: loop header
LB: loop body
LE: loop exit
PB: predicated region body
PF: predicated region fallthrough
CT: control target
= control target key end

     0   :  { %s1517_s12 = smov 0   ;;  %s1519_s13 = smov 0   ;;  %s2165_s0 = inlined_call_operand.vmem [shape: f32[2,14,1024], index: 0, kind: input, shape index: {}]   ;;  %s2166_s1 = inlined_call_operand.vmem [shape: f32[14,14], index: 1, kind: input, shape index: {}]   ;;  %s2167_s2 = inlined_call_operand.vmem [shape: f32[14,1], index: 2, kind: input, shape index: {}]   ;;  %s2168_s3 = inlined_call_operand.vmem [shape: f32[2,14,1024], index: 3, kind: output, shape index: {}]  }
   0x1   :  { %s1521_s14 = smov 0  }
   0x2 LB: > { %s25_s15 = sadd.s32 1, %s1490_s13  ;;  %p1291_p0 = scmp.ge.s32.totalorder %s1494_s14, 1  ;;  %s1494_s14 = sphi %s1521_s14, %s13_s14   ;;  %s1490_s13 = sphi %s1519_s13, %s2204_s13   ;;  %s1486_s12 = sphi %s1517_s12, %s2203_s12  }
   0x3   : > { %p27_p1 = scmp.ge.s32.totalorder %s25_s15, 2  ;;  %p158_p2 = scmp.lt.s32.totalorder %s1494_s14, 3 }
   0x5   : > { %s2206_s15 = smov (%p27_p1, %s25_s15), 0  ;;  %p159_p3 = pnand %p1291_p0, %p158_p2 }
   0x6   : > { %p191_p4 = scmp.lt.s32.totalorder (!%p159_p3), %s1486_s12, 1 }
   0x7   : > { %162 = sbr.rel (%p159_p3) target bundleno = 334 (0x14e), region = 32 }
   0xc   : > { %v228_v0 = vld [vmem:[%s2167_s2] sm:$0xff]  ;;  %s2208_s12 = smov (!%p191_p4, %s1486_s12), 1  ;;  %v1496_v1 = vmov 0   ;;  %vm247_vm0 = vcmask 1045504   ;;  %vm240_vm1 = vcmask 113664   ;;  %vm822_vm10 = vcmask 1040384  }
   0xd   : > { %1359 = vset.pattern.permute.xlu0 %v1496_v1  ;;  %s1332_s18 = sshll.u32 %s2208_s12, 7  ;;  %v226_v10 = vld [vmem:[%s2166_s1] sm:$0xff]  ;;  %v229_v19 = vld [vmem:[%s2167_s2 + $0x8] sm:$0x3f]  ;;  %vm855_vm11 = vcmask 1043456  }
   0xe   : > { %232 = vperm.xlu0 %1359, %v228_v0   ;;  %s1546_s21 = scalar_lea.vmem %s2165_s0, %s1332_s18  ;;  %v227_v20 = vld [vmem:[%s2166_s1 + $0x8] sm:$0x3f]  ;;  %s1610_s30 = scalar_lea.vmem %s2168_s3, %s1332_s18 }
   0xf   : > { %v218_v2 = vld [vmem:[%s1546_s21 + $0x40] sm:$0x3f]  ;;  %v219_v3 = vld [vmem:[%s1546_s21 + $0x48] sm:$0x3f]  ;;  %v220_v4 = vld [vmem:[%s1546_s21 + $0x50] sm:$0x3f] }
  0x10   : > { %1296 = vmatpush.msk.msra.mxu0 %vm247_vm0, %v218_v2  ;;  %1299 = vmatpush.msk.msra.mxu1 %vm247_vm0, %v219_v3  ;;  %v221_v5 = vld [vmem:[%s1546_s21 + $0x58] sm:$0x3f]  ;;  %v210_v6 = vld [vmem:[%s1546_s21] sm:$0xff]  ;;  %v211_v7 = vld [vmem:[%s1546_s21 + $0x8] sm:$0xff] }
  0x11   : > { %1302 = vmatpush.msk.msra.mxu2 %vm247_vm0, %v220_v4  ;;  %1305 = vmatpush.msk.msra.mxu3 %vm247_vm0, %v221_v5  ;;  %v212_v8 = vld [vmem:[%s1546_s21 + $0x10] sm:$0xff]  ;;  %v213_v9 = vld [vmem:[%s1546_s21 + $0x18] sm:$0xff]  ;;  %v222_v13 = vld [vmem:[%s1546_s21 + $0x60] sm:$0x3f] }
  0x12   : > { %287 = vmatpush.msra.mxu0 %v210_v6  ;;  %310 = vmatpush.msra.mxu1 %v211_v7  ;;  %v224_v11 = vld [vmem:[%s1546_s21 + $0x70] sm:$0x3f]  ;;  %v225_v12 = vld [vmem:[%s1546_s21 + $0x78] sm:$0x3f]  ;;  %v223_v14 = vld [vmem:[%s1546_s21 + $0x68] sm:$0x3f] }
  0x13   : > { %333 = vmatpush.msra.mxu2 %v212_v8  ;;  %356 = vmatpush.msra.mxu3 %v213_v9  ;;  %v216_v15 = vld [vmem:[%s1546_s21 + $0x30] sm:$0xff]  ;;  %v217_v16 = vld [vmem:[%s1546_s21 + $0x38] sm:$0xff]  ;;  %v214_v17 = vld [vmem:[%s1546_s21 + $0x20] sm:$0xff] }
  0x14   : > { %1297 = vmatmul.msk.f32.vlgmr.msra.gmra.mxu0 %vm240_vm1, %v226_v10  ;;  %1300 = vmatmul.msk.f32.vlgmr.msra.gmra.mxu1 %vm240_vm1, %v226_v10  ;;  %v215_v18 = vld [vmem:[%s1546_s21 + $0x28] sm:$0xff] }
  0x15   : > { %1303 = vmatmul.msk.f32.vlgmr.msra.gmra.mxu2 %vm240_vm1, %v226_v10  ;;  %1306 = vmatmul.msk.f32.vlgmr.msra.gmra.mxu3 %vm240_vm1, %v226_v10 }
  0x16   : > { %1314 = vmatpush.msk.msrb.mxu2 %vm247_vm0, %v224_v11  ;;  %1317 = vmatpush.msk.msrb.mxu3 %vm247_vm0, %v225_v12 }
  0x17   : > { %1308 = vmatpush.msk.msrb.mxu0 %vm247_vm0, %v222_v13  ;;  %1311 = vmatpush.msk.msrb.mxu1 %vm247_vm0, %v223_v14 }
  0x18   : > { %425 = vmatpush.msrb.mxu2 %v216_v15  ;;  %448 = vmatpush.msrb.mxu3 %v217_v16 }
  0x19   : > { %379 = vmatpush.msrb.mxu0 %v214_v17  ;;  %402 = vmatpush.msrb.mxu1 %v215_v18 }
  0x1a   : > { %237 = vperm.xlu0 %1359, %v229_v19  }
  0x1c   : > { %1298 = vmatmul.msk.f32.gmra.mxu0 %vm240_vm1, %v227_v20  ;;  %1301 = vmatmul.msk.f32.gmra.mxu1 %vm240_vm1, %v227_v20 }
  0x1d   : > { %1304 = vmatmul.msk.f32.gmra.mxu2 %vm240_vm1, %v227_v20  ;;  %1307 = vmatmul.msk.f32.gmra.mxu3 %vm240_vm1, %v227_v20 }
  0x24   : > { %1309 = vmatmul.msk.f32.vlgmr.msrb.gmra.mxu0 %vm240_vm1, %v226_v10  ;;  %1312 = vmatmul.msk.f32.vlgmr.msrb.gmra.mxu1 %vm240_vm1, %v226_v10 }
  0x25   : > { %1315 = vmatmul.msk.f32.vlgmr.msrb.gmra.mxu2 %vm240_vm1, %v226_v10  ;;  %1318 = vmatmul.msk.f32.vlgmr.msrb.gmra.mxu3 %vm240_vm1, %v226_v10 }
  0x2c   : > { %1310 = vmatmul.msk.f32.gmra.mxu0 %vm240_vm1, %v227_v20  ;;  %1313 = vmatmul.msk.f32.gmra.mxu1 %vm240_vm1, %v227_v20 }
  0x2d   : > { %1316 = vmatmul.msk.f32.gmra.mxu2 %vm240_vm1, %v227_v20  ;;  %1319 = vmatmul.msk.f32.gmra.mxu3 %vm240_vm1, %v227_v20 }
  0x80   : > { %v1597_v21 = vpop.permute.xlu0 %232 }
  0x8c   : > { %v1620_v36 = vpop.permute.xlu0 %237 }
  0x91   : > { %v289_v22 = vpop.f32.mrf.mxu0  ;;  %v312_v23 = vpop.f32.mrf.mxu1 }
  0x92   : > { %v1600_v24 = vadd.f32 %v289_v22, %v1597_v21  ;;  %v1603_v25 = vadd.f32 %v312_v23, %v1597_v21 }
  0x94   : > { %v1320_v26 = vclamps-f32 %v1600_v24, 1.0  ;;  %v480_v27 = vsub.f32 0.0, %v1600_v24  ;;  %v662_v28 = vand.u32 2147483647, %v1600_v24  ;;  %v1321_v29 = vclamps-f32 %v1603_v25, 1.0 }
  0x95   : > { %v481_v30 = vsub.f32 0.0, %v1603_v25  ;;  %v663_v31 = vand.u32 2147483647, %v1603_v25  ;;  %v1630_v45 = vmul.f32 %v1600_v24, %v1600_v24  ;;  %v1648_v55 = vmul.f32 %v1603_v25, %v1603_v25 }
  0x96   : > { %472 = vst [vmem:[%s1610_s30] sm:$0x7] %v1320_v26  ;;  %v488_v32 = vmul.f32 1.442695, %v480_v27  ;;  %v670_v33 = vsub.f32 0.0, %v662_v28  ;;  %v654_v57 = vmax.f32 %v1600_v24, 0.0  ;;  %v655_v2 = vmax.f32 %v1603_v25, 0.0 }
  0x97   : > { %473 = vst [vmem:[%s1610_s30 + $0x8] sm:$0x7] %v1321_v29  ;;  %v490_v34 = vmul.f32 1.442695, %v481_v30  ;;  %v671_v35 = vsub.f32 0.0, %v663_v31  ;;  %v823_v3 = vrot.slane %v1630_v45, 7 }
  0x98   : > { %1360 = vpow2.f32 %v488_v32  ;;  %v678_v37 = vmul.f32 1.442695, %v670_v33  ;;  %v335_v38 = vpop.f32.mrf.mxu2  ;;  %v358_v39 = vpop.f32.mrf.mxu3  ;;  %v826_v6 = vrot.slane %v1648_v55, 7 }
  0x99   : > { %1362 = vpow2.f32 %v490_v34  ;;  %v680_v40 = vmul.f32 1.442695, %v671_v35  ;;  %v1623_v41 = vadd.f32 %v335_v38, %v1597_v21  ;;  %v1626_v42 = vadd.f32 %v358_v39, %v1597_v21  ;;  %v292_v43 = vpop.f32.mrf.mxu0  ;;  %v315_v44 = vpop.f32.mrf.mxu1 }
  0x9a   : > { %1364 = vpow2.f32 %v678_v37  ;;  %v1635_v48 = vadd.f32 %v292_v43, %v1620_v36  ;;  %v1638_v49 = vadd.f32 %v315_v44, %v1620_v36 }
  0x9b   : > { %v1322_v46 = vclamps-f32 %v1623_v41, 1.0  ;;  %v482_v47 = vsub.f32 0.0, %v1623_v41  ;;  %1366 = vpow2.f32 %v680_v40  ;;  %v664_v50 = vand.u32 2147483647, %v1623_v41 }
  0x9c   : > { %v1323_v51 = vclamps-f32 %v1626_v42, 1.0  ;;  %v483_v52 = vsub.f32 0.0, %v1626_v42  ;;  %v665_v54 = vand.u32 2147483647, %v1626_v42  ;;  %1368 = vtanh.f32 %v1635_v48 }
  0x9d   : > { %474 = vst [vmem:[%s1610_s30 + $0x10] sm:$0x7] %v1322_v46  ;;  %v492_v53 = vmul.f32 1.442695, %v482_v47  ;;  %v672_v58 = vsub.f32 0.0, %v664_v50  ;;  %1370 = vtanh.f32 %v1638_v49  ;;  %v1657_v62 = vmul.f32 %v1635_v48, %v1635_v48 }
  0x9e   : > { %v1361_v56 = vpop.eup %1360  ;;  %475 = vst [vmem:[%s1610_s30 + $0x18] sm:$0x7] %v1323_v51  ;;  %v494_v59 = vmul.f32 1.442695, %v483_v52  ;;  %v1661_v63 = vmul.f32 %v1638_v49, %v1638_v49  ;;  %v656_v4 = vmax.f32 %v1623_v41, 0.0  ;;  %v673_v13 = vsub.f32 0.0, %v665_v54 }
  0x9f   : > { %v1363_v60 = vpop.eup %1362  ;;  %v1653_v61 = vadd.f32 1.0, %v1361_v56  ;;  %1372 = vpow2.f32 %v492_v53  ;;  %v682_v5 = vmul.f32 1.442695, %v672_v58  ;;  %v824_v14 = vrot.slane %v1657_v62, 7 }
  0xa0   : > { %v1365_v0 = vpop.eup %1364  ;;  %v1663_v1 = vadd.f32 1.0, %v1363_v60  ;;  %1374 = vpow2.f32 %v494_v59  ;;  %v827_v15 = vrot.slane %v1661_v63, 7 }
  0xa1   : > { %1376 = vrcp.f32 %v1653_v61  ;;  %v1367_v7 = vpop.eup %1366  ;;  %v523_v8 = vand.u32 2147483648, %v1653_v61  ;;  %v694_v9 = vadd.f32 1.0, %v1365_v0  ;;  %v697_v10 = vmul.f32 -0.5, %v1365_v0 }
  0xa2   : > { %1378 = vrcp.f32 %v1663_v1  ;;  %v1672_v11 = vpop.eup %1368  ;;  %v700_v12 = vand.u32 2147483647, %v1365_v0  ;;  %vm517_vm2 = vweird.f32 %v1653_v61  ;;  %v521_v17 = vand.u32 2147483647, %v1653_v61 }
  0xa3   : > { %v1676_v16 = vpop.eup %1370  ;;  %1380 = vlog2.f32 %v694_v9  ;;  %v698_v18 = vadd.f32 1.0, %v697_v10  ;;  %v538_v19 = vand.u32 2147483648, %v1663_v1  ;;  %v536_v22 = vand.u32 2147483647, %v1663_v1 }
  0xa4   : > { %v703_v23 = vadd.f32 1.0, %v1367_v7  ;;  %v706_v26 = vmul.f32 -0.5, %v1367_v7  ;;  %v709_v27 = vand.u32 2147483647, %v1367_v7  ;;  %v524_v29 = vor.u32 1.1754944e-38, %v523_v8 }
  0xa5   : > { %v1373_v20 = vpop.eup %1372  ;;  %vm532_vm3 = vweird.f32 %v1663_v1  ;;  %1382 = vpow2.f32 %v682_v5  ;;  %vm1685_vm4 = vcmp.lt.f32.partialorder %v700_v12, 0.0004427343  ;;  %vm1692_vm5 = vcmp.eq.f32.partialorder %v521_v17, 8.507059e+37 }
  0xa6   : > { %v1375_v28 = vpop.eup %1374  ;;  %v1683_v30 = vadd.f32 1.0, %v1373_v20  ;;  %1384 = vlog2.f32 %v703_v23  ;;  %v707_v33 = vadd.f32 1.0, %v706_v26  ;;  %v699_v39 = vmul.f32 %v1365_v0, %v698_v18 }
  0xa7   : > { %v1377_v31 = vpop.eup %1376  ;;  %v1689_v34 = vadd.f32 1.0, %v1375_v28  ;;  %v539_v40 = vor.u32 1.1754944e-38, %v538_v19  ;;  %vm1698_vm8 = vcmp.eq.f32.partialorder %v536_v22, 8.507059e+37  ;;  %vm1702_vm9 = vcmp.lt.f32.partialorder %v709_v27, 0.0004427343 }
  0xa8   : > { %v1379_v35 = vpop.eup %1378  ;;  %v513_v37 = vmul.f32 %v1377_v31, %v1653_v61  ;;  %1386 = vrcp.f32 %v1683_v30  ;;  %vm518_vm6 = vweird.f32 %v1377_v31  ;;  %v551_v51 = vand.u32 2147483647, %v1683_v30 }
  0xa9   : > { %v528_v43 = vmul.f32 %v1379_v35, %v1663_v1  ;;  %vm533_vm7 = vweird.f32 %v1379_v35  ;;  %v1381_v47 = vpop.eup %1380  ;;  %v553_v52 = vand.u32 2147483648, %v1683_v30  ;;  %1388 = vrcp.f32 %v1689_v34  ;;  %vm519_vm13 = vmor %vm517_vm2, %vm518_vm6 }
  0xaa   : > { %v514_v50 = vsub.f32 1.0, %v513_v37  ;;  %v696_v53 = vmul.f32 0.6931472, %v1381_v47  ;;  %v708_v56 = vmul.f32 %v1367_v7, %v707_v33  ;;  %v566_v58 = vand.u32 2147483647, %v1689_v34  ;;  %vm534_vm0 = vmor %vm532_vm3, %vm533_vm7 }
  0xab   : > { %v529_v54 = vsub.f32 1.0, %v528_v43  ;;  %v1383_v59 = vpop.eup %1382  ;;  %v1710_v0 = vor.u32 1.1754944e-38, %v553_v52  ;;  %v568_v5 = vand.u32 2147483648, %v1689_v34  ;;  %v684_v8 = vmul.f32 1.442695, %v673_v13 }
  0xac   : > { %v515_v60 = vmul.f32 %v1377_v31, %v514_v50  ;;  %v1385_v9 = vpop.eup %1384  ;;  %v702_v10 = vsel %vm1685_vm4, %v699_v39, %v696_v53  ;;  %vm547_vm12 = vweird.f32 %v1683_v30  ;;  %v712_v17 = vadd.f32 1.0, %v1383_v59 }
  0xad   : > { %v530_v12 = vmul.f32 %v1379_v35, %v529_v54  ;;  %v715_v18 = vmul.f32 -0.5, %v1383_v59  ;;  %v766_v20 = vadd.f32 %v702_v10, %v654_v57  ;;  %v705_v22 = vmul.f32 0.6931472, %v1385_v9 }
  0xae   : > { %v1387_v19 = vpop.eup %1386  ;;  %v516_v7 = vadd.f32 %v1377_v31, %v515_v60  ;;  %v718_v23 = vand.u32 2147483647, %v1383_v59  ;;  %vm1722_vm15 = vcmp.eq.f32.partialorder %v551_v51, 8.507059e+37  ;;  %1390 = vlog2.f32 %v712_v17 }
  0xaf   : > { %v531_v13 = vadd.f32 %v1379_v35, %v530_v12  ;;  %v543_v26 = vmul.f32 %v1387_v19, %v1683_v30  ;;  %vm548_vm14 = vweird.f32 %v1387_v19  ;;  %v1389_v28 = vpop.eup %1388  ;;  %v774_v33 = vmul.f32 0.1, %v766_v20 }
  0xb0   : > { %v520_v32 = vsel %vm519_vm13, %v1377_v31, %v516_v7  ;;  %v711_v57 = vsel %vm1702_vm9, %v708_v56, %v705_v22  ;;  %v716_v61 = vadd.f32 1.0, %v715_v18  ;;  %vm562_vm1 = vweird.f32 %v1689_v34 }
  0xb1   : > { %v525_v37 = vsel %vm1692_vm5, %v524_v29, %v520_v32  ;;  %v535_v39 = vsel %vm534_vm0, %v1379_v35, %v531_v13  ;;  %v767_v43 = vadd.f32 %v711_v57, %v655_v2  ;;  %v544_v47 = vsub.f32 1.0, %v543_v26  ;;  %782 = vst [vmem:[%s1610_s30] sm:$0x70] %v774_v33  ;;  %vm549_vm5 = vmor %vm547_vm12, %vm548_vm14  ;;  %v381_v57 = vpop.f32.mrf.mxu0 }
  0xb2   : > { %640 = vst [vmem:[#allocation1] sm:$0xff] %v525_v37  ;;  %v540_v1 = vsel %vm1698_vm8, %v539_v40, %v535_v39  ;;  %v717_v31 = vmul.f32 %v1383_v59, %v716_v61  ;;  %vm1738_vm2 = vcmp.lt.f32.partialorder %v718_v23, 0.0004427343  ;;  %v558_v50 = vmul.f32 %v1389_v28, %v1689_v34 }
  0xb3   : > { %v775_v38 = vmul.f32 0.1, %v767_v43  ;;  %v545_v29 = vmul.f32 %v1387_v19, %v544_v47  ;;  %vm563_vm3 = vweird.f32 %v1389_v28  ;;  %vm1744_vm4 = vcmp.eq.f32.partialorder %v566_v58, 8.507059e+37  ;;  %641 = vst [vmem:[#allocation1 + $0x9] sm:$0xff] %v540_v1  ;;  %v338_v58 = vpop.f32.mrf.mxu2 }
  0xb4   : > { %v559_v2 = vsub.f32 1.0, %v558_v50  ;;  %v569_v44 = vor.u32 1.1754944e-38, %v568_v5  ;;  %1392 = vpow2.f32 %v684_v8  ;;  %v825_v40 = vsel %vm822_vm10, %v823_v3, %v824_v14  ;;  %v1391_v51 = vpop.eup %1390  ;;  %vm564_vm6 = vmor %vm562_vm1, %vm563_vm3 }
  0xb5   : > { %783 = vst [vmem:[%s1610_s30 + $0x8] sm:$0x70] %v775_v38  ;;  %v546_v52 = vadd.f32 %v1387_v19, %v545_v29  ;;  %v856_v53 = vsel %vm855_vm11, %v825_v40, 0.0  ;;  %v1176_v54 = vmul.f32 0.5, %v1672_v11  ;;  %v828_v56 = vsel %vm822_vm10, %v826_v6, %v827_v15  ;;  %v361_v11 = vpop.f32.mrf.mxu3  ;;  %v404_v29 = vpop.f32.mrf.mxu1 }
  0xb6   : > { %v714_v45 = vmul.f32 0.6931472, %v1391_v51  ;;  %v560_v62 = vmul.f32 %v1389_v28, %v559_v2  ;;  %v857_v3 = vrot.slane %v856_v53, 4  ;;  %v863_v14 = vsel %vm855_vm11, %v828_v56, 0.0 }
  0xb7   : > { %v550_v59 = vsel %vm549_vm5, %v1387_v19, %v546_v52  ;;  %v1184_v60 = vadd.f32 0.5, %v1176_v54  ;;  %v864_v5 = vrot.slane %v863_v14, 4  ;;  %v1177_v63 = vmul.f32 0.5, %v1676_v16 }
  0xb8   : > { %v555_v55 = vsel %vm1722_vm15, %v1710_v0, %v550_v59  ;;  %v720_v6 = vsel %vm1738_vm2, %v717_v31, %v714_v45  ;;  %v561_v15 = vadd.f32 %v1389_v28, %v560_v62  ;;  %v858_v30 = vadd.f32 %v857_v3, %v856_v53 }
  0xb9   : > { %642 = vst [vmem:[#allocation1 + $0x12] sm:$0xff] %v555_v55  ;;  %v768_v8 = vadd.f32 %v720_v6, %v656_v4  ;;  %v865_v16 = vadd.f32 %v864_v5, %v863_v14  ;;  %v1185_v9 = vadd.f32 0.5, %v1177_v63  ;;  %v1777_v10 = vadd.f32 %v338_v58, %v1620_v36 }
  0xba   : > { %v1393_v0 = vpop.eup %1392  ;;  %v565_v12 = vsel %vm564_vm6, %v1389_v28, %v561_v15  ;;  %v859_v17 = vrot.slane %v858_v30, 2  ;;  %1192 = vst [vmem:[%s1610_s30 + $0x40] sm:$0x38] %v1184_v60  ;;  %v792_v18 = vmul.f32 %v1623_v41, %v1623_v41  ;;  %v1783_v19 = vadd.f32 %v361_v11, %v1620_v36 }
  0xbb   : > { %v776_v4 = vmul.f32 0.1, %v768_v8  ;;  %v570_v34 = vsel %vm1744_vm4, %v569_v44, %v565_v12  ;;  %v721_v7 = vadd.f32 1.0, %v1393_v0  ;;  %v724_v20 = vmul.f32 -0.5, %v1393_v0  ;;  %1193 = vst [vmem:[%s1610_s30 + $0x48] sm:$0x38] %v1185_v9 }
  0xbc   : > { %643 = vst [vmem:[#allocation1 + $0x1b] sm:$0xff] %v570_v34  ;;  %v860_v22 = vadd.f32 %v859_v17, %v858_v30  ;;  %v866_v23 = vrot.slane %v865_v16, 2  ;;  %v800_v13 = vmul.f32 %v1777_v10, %v1777_v10  ;;  %v793_v26 = vmul.f32 %v1626_v42, %v1626_v42 }
  0xbd   : > { %784 = vst [vmem:[%s1610_s30 + $0x10] sm:$0x70] %v776_v4  ;;  %1394 = vlog2.f32 %v721_v7  ;;  %v829_v32 = vrot.slane %v792_v18, 7  ;;  %v725_v61 = vadd.f32 1.0, %v724_v20  ;;  %v727_v37 = vand.u32 2147483647, %v1393_v0 }
  0xbe   : > { %v861_v27 = vrot.slane %v860_v22, 1  ;;  %v867_v28 = vadd.f32 %v866_v23, %v865_v16  ;;  %v830_v33 = vrot.slane %v800_v13, 7  ;;  %1396 = vtanh.f32 %v1777_v10 }
  0xbf   : > { %v801_v39 = vmul.f32 %v1783_v19, %v1783_v19  ;;  %1398 = vtanh.f32 %v1783_v19  ;;  %v832_v46 = vrot.slane %v793_v26, 7  ;;  %v1802_v38 = vadd.f32 %v381_v57, %v1597_v21 }
  0xc0   : > { %v1796_v43 = vadd.f32 %v861_v27, %v860_v22  ;;  %v868_v47 = vrot.slane %v867_v28, 1  ;;  %v831_v1 = vsel %vm822_vm10, %v829_v32, %v830_v33  ;;  %v726_v53 = vmul.f32 %v1393_v0, %v725_v61  ;;  %v427_v0 = vpop.f32.mrf.mxu2 }
  0xc1   : > { %v870_v31 = vsel %vm855_vm11, %v831_v1, 0.0  ;;  %v833_v50 = vrot.slane %v801_v39, 7  ;;  %v1324_v51 = vclamps-f32 %v1802_v38, 1.0  ;;  %v484_v56 = vsub.f32 0.0, %v1802_v38 }
  0xc2   : > { %1400 = vrsqrt.f32 %v1796_v43  ;;  %v1805_v2 = vadd.f32 %v868_v47, %v867_v28  ;;  %v871_v44 = vrot.slane %v870_v31, 4  ;;  %v657_v62 = vmax.f32 %v1626_v42, 0.0 }
  0xc3   : > { %v1395_v35 = vpop.eup %1394  ;;  %v834_v40 = vsel %vm822_vm10, %v832_v46, %v833_v50  ;;  %vm728_vm7 = vcmp.lt.f32.partialorder %v727_v37, 0.0004427343  ;;  %476 = vst [vmem:[%s1610_s30 + $0x20] sm:$0x7] %v1324_v51  ;;  %v1815_v3 = vadd.f32 %v404_v29, %v1597_v21  ;;  %v496_v55 = vmul.f32 1.442695, %v484_v56 }
  0xc4   : > { %v723_v52 = vmul.f32 0.6931472, %v1395_v35  ;;  %v877_v54 = vsel %vm855_vm11, %v834_v40, 0.0  ;;  %v1397_v45 = vpop.eup %1396  ;;  %1402 = vrsqrt.f32 %v1805_v2  ;;  %v872_v59 = vadd.f32 %v871_v44, %v870_v31 }
  0xc5   : > { %v1399_v14 = vpop.eup %1398  ;;  %v1178_v60 = vmul.f32 0.5, %v1397_v45  ;;  %v878_v5 = vrot.slane %v877_v54, 4  ;;  %v666_v6 = vand.u32 2147483647, %v1802_v38  ;;  %v1325_v9 = vclamps-f32 %v1815_v3, 1.0 }
  0xc6   : > { %v729_v58 = vsel %vm728_vm7, %v726_v53, %v723_v52  ;;  %v1179_v11 = vmul.f32 0.5, %v1399_v14  ;;  %v873_v30 = vrot.slane %v872_v59, 2  ;;  %1404 = vpow2.f32 %v496_v55 }
  0xc7   : > { %v769_v63 = vadd.f32 %v729_v58, %v657_v62  ;;  %v1186_v8 = vadd.f32 0.5, %v1178_v60  ;;  %v879_v16 = vadd.f32 %v878_v5, %v877_v54  ;;  %v674_v7 = vsub.f32 0.0, %v666_v6  ;;  %477 = vst [vmem:[%s1610_s30 + $0x28] sm:$0x7] %v1325_v9 }
  0xc8   : > { %v1401_v15 = vpop.eup %1400  ;;  %v1187_v18 = vadd.f32 0.5, %v1179_v11  ;;  %v874_v4 = vadd.f32 %v873_v30, %v872_v59  ;;  %v485_v20 = vsub.f32 0.0, %v1815_v3  ;;  %v667_v13 = vand.u32 2147483647, %v1815_v3 }
  0xc9   : > { %v777_v12 = vmul.f32 0.1, %v769_v63  ;;  %v913_v17 = vmul.f32 %v1401_v15, %v1796_v43  ;;  %1194 = vst [vmem:[%s1610_s30 + $0x50] sm:$0x38] %v1186_v8  ;;  %v880_v34 = vrot.slane %v879_v16, 2  ;;  %v1825_v26 = vadd.f32 %v427_v0, %v1597_v21 }
  0xca   : > { %v1403_v22 = vpop.eup %1402  ;;  %v875_v28 = vrot.slane %v874_v4, 1  ;;  %1195 = vst [vmem:[%s1610_s30 + $0x58] sm:$0x38] %v1187_v18  ;;  %v686_v33 = vmul.f32 1.442695, %v674_v7  ;;  %v675_v46 = vsub.f32 0.0, %v667_v13 }
  0xcb   : > { %785 = vst [vmem:[%s1610_s30 + $0x18] sm:$0x70] %v777_v12  ;;  %v914_v23 = vmul.f32 %v1401_v15, %v913_v17  ;;  %v925_v27 = vmul.f32 %v1403_v22, %v1805_v2  ;;  %v881_v32 = vadd.f32 %v880_v34, %v879_v16  ;;  %v498_v61 = vmul.f32 1.442695, %v485_v20 }
  0xcc   : > { %v1830_v39 = vadd.f32 %v875_v28, %v874_v4  ;;  %1406 = vpow2.f32 %v686_v33  ;;  %v1405_v1 = vpop.eup %1404  ;;  %v1326_v50 = vclamps-f32 %v1825_v26, 1.0  ;;  %vm919_vm8 = vcmp.eq.f32.partialorder %v1796_v43, inf }
  0xcd   : > { %v915_v57 = vmul.f32 0.5, %v914_v23  ;;  %v926_v37 = vmul.f32 %v1403_v22, %v925_v27  ;;  %v882_v47 = vrot.slane %v881_v32, 1  ;;  %v1836_v40 = vadd.f32 1.0, %v1405_v1 }
  0xce   : > { %1408 = vrsqrt.f32 %v1830_v39  ;;  %478 = vst [vmem:[%s1610_s30 + $0x30] sm:$0x7] %v1326_v50  ;;  %vm921_vm9 = vcmp.eq.f32.partialorder %v1796_v43, 0.0  ;;  %v688_v53 = vmul.f32 1.442695, %v675_v46  ;;  %v922_v56 = vand.u32 2147483648, %v1796_v43 }
  0xcf   : > { %v916_v31 = vsub.f32 1.5, %v915_v57  ;;  %v927_v29 = vmul.f32 0.5, %v926_v37  ;;  %v1834_v44 = vadd.f32 %v882_v47, %v881_v32  ;;  %1410 = vpow2.f32 %v498_v61 }
  0xd0   : > { %v658_v62 = vmax.f32 %v1802_v38, 0.0  ;;  %vm931_vm12 = vcmp.eq.f32.partialorder %v1805_v2, inf  ;;  %vm933_vm13 = vcmp.eq.f32.partialorder %v1805_v2, 0.0  ;;  %v934_v63 = vand.u32 2147483648, %v1805_v2 }
  0xd1   : > { %v917_v35 = vmul.f32 %v1401_v15, %v916_v31  ;;  %v928_v51 = vsub.f32 1.5, %v927_v29  ;;  %1412 = vrsqrt.f32 %v1834_v44  ;;  %v659_v11 = vmax.f32 %v1815_v3, 0.0 }
  0xd2   : > { %v1407_v54 = vpop.eup %1406  ;;  %1414 = vrcp.f32 %v1836_v40  ;;  %v946_v8 = vand.u32 2147483648, %v1830_v39  ;;  %v486_v16 = vsub.f32 0.0, %v1825_v26  ;;  %v581_v0 = vand.u32 2147483647, %v1836_v40 }
  0xd3   : > { %v918_v52 = vmul.f32 %v917_v35, %v1796_v43  ;;  %v929_v45 = vmul.f32 %v1403_v22, %v928_v51  ;;  %v730_v58 = vadd.f32 1.0, %v1407_v54  ;;  %v733_v15 = vmul.f32 -0.5, %v1407_v54 }
  0xd4   : > { %v1409_v59 = vpop.eup %1408  ;;  %1416 = vpow2.f32 %v688_v53  ;;  %v583_v12 = vand.u32 2147483648, %v1836_v40  ;;  %v736_v17 = vand.u32 2147483647, %v1407_v54  ;;  %v958_v20 = vand.u32 2147483648, %v1834_v44 }
  0xd5   : > { %v920_v14 = vsel %vm919_vm8, %v1796_v43, %v918_v52  ;;  %v930_v5 = vmul.f32 %v929_v45, %v1805_v2  ;;  %v937_v6 = vmul.f32 %v1409_v59, %v1830_v39  ;;  %v1411_v43 = vpop.eup %1410  ;;  %1418 = vlog2.f32 %v730_v58 }
  0xd6   : > { %v923_v60 = vsel %vm921_vm9, %v922_v56, %v920_v14  ;;  %vm943_vm14 = vcmp.eq.f32.partialorder %v1830_v39, inf  ;;  %vm577_vm15 = vweird.f32 %v1836_v40  ;;  %v734_v13 = vadd.f32 1.0, %v733_v15 }
  0xd7   : > { %v1852_v55 = vmax.f32 %v923_v60, 1e-12  ;;  %v932_v30 = vsel %vm931_vm12, %v1805_v2, %v930_v5  ;;  %v1413_v9 = vpop.eup %1412  ;;  %v938_v34 = vmul.f32 %v1409_v59, %v937_v6  ;;  %vm945_vm0 = vcmp.eq.f32.partialorder %v1830_v39, 0.0 }
  0xd8   : > { %v1861_v18 = vpop.eup %1414  ;;  %v935_v4 = vsel %vm933_vm13, %v934_v63, %v932_v30  ;;  %v949_v7 = vmul.f32 %v1413_v9, %v1834_v44  ;;  %v1875_v32 = vadd.f32 1.0, %v1411_v43  ;;  %vm1881_vm1 = vcmp.eq.f32.partialorder %v581_v0, 8.507059e+37 }
  0xd9   : > { %1420 = vrcp.f32 %v1852_v55  ;;  %v1867_v22 = vmax.f32 %v935_v4, 1e-12  ;;  %v573_v23 = vmul.f32 %v1861_v18, %v1836_v40  ;;  %v1025_v27 = vand.u32 2147483647, %v1852_v55 }
  0xda   : > { %v939_v28 = vmul.f32 0.5, %v938_v34  ;;  %v950_v2 = vmul.f32 %v1413_v9, %v949_v7  ;;  %v1877_v33 = vpop.eup %1416  ;;  %v1027_v57 = vand.u32 2147483648, %v1852_v55  ;;  %v584_v37 = vor.u32 1.1754944e-38, %v583_v12 }
  0xdb   : > { %1422 = vrcp.f32 %v1867_v22  ;;  %vm1885_vm2 = vcmp.lt.f32.partialorder %v736_v17, 0.0004427343  ;;  %v1419_v1 = vpop.eup %1418  ;;  %vm955_vm3 = vcmp.eq.f32.partialorder %v1834_v44, inf  ;;  %v574_v50 = vsub.f32 1.0, %v573_v23 }
  0xdc   : > { %v940_v31 = vsub.f32 1.5, %v939_v28  ;;  %v951_v46 = vmul.f32 0.5, %v950_v2  ;;  %1424 = vrcp.f32 %v1875_v32  ;;  %vm1021_vm4 = vweird.f32 %v1852_v55 }
  0xdd   : > { %v1042_v35 = vand.u32 2147483648, %v1867_v22  ;;  %v732_v51 = vmul.f32 0.6931472, %v1419_v1  ;;  %v735_v52 = vmul.f32 %v1407_v54, %v734_v13  ;;  %vm1894_vm5 = vcmp.eq.f32.partialorder %v1025_v27, 8.507059e+37 }
  0xde   : > { %v1040_v45 = vand.u32 2147483647, %v1867_v22  ;;  %v941_v14 = vmul.f32 %v1409_v59, %v940_v31  ;;  %v952_v58 = vsub.f32 1.5, %v951_v46  ;;  %vm957_vm6 = vcmp.eq.f32.partialorder %v1834_v44, 0.0 }
  0xdf   : > { %v1421_v29 = vpop.eup %1420  ;;  %v1028_v60 = vor.u32 1.1754944e-38, %v1027_v57  ;;  %v575_v5 = vmul.f32 %v1861_v18, %v574_v50  ;;  %vm578_vm7 = vweird.f32 %v1861_v18  ;;  %v738_v54 = vsel %vm1885_vm2, %v735_v52, %v732_v51 }
  0xe0   : > { %v1017_v53 = vmul.f32 %v1421_v29, %v1852_v55  ;;  %vm1036_vm8 = vweird.f32 %v1867_v22  ;;  %v942_v6 = vmul.f32 %v941_v14, %v1830_v39  ;;  %v953_v15 = vmul.f32 %v1413_v9, %v952_v58  ;;  %vm579_vm13 = vmor %vm577_vm15, %vm578_vm7  ;;  %v450_v14 = vpop.f32.mrf.mxu3 }
  0xe1   : > { %v770_v59 = vadd.f32 %v738_v54, %v658_v62  ;;  %v1423_v43 = vpop.eup %1422  ;;  %vm1022_vm9 = vweird.f32 %v1421_v29  ;;  %v1043_v30 = vor.u32 1.1754944e-38, %v1042_v35  ;;  %v576_v0 = vadd.f32 %v1861_v18, %v575_v5 }
  0xe2   : > { %v1018_v63 = vsub.f32 1.0, %v1017_v53  ;;  %v739_v12 = vadd.f32 1.0, %v1877_v33  ;;  %v1910_v17 = vpop.eup %1424  ;;  %v1032_v34 = vmul.f32 %v1423_v43, %v1867_v22  ;;  %vm1913_vm12 = vcmp.eq.f32.partialorder %v1040_v45, 8.507059e+37 }
  0xe3   : > { %v944_v62 = vsel %vm943_vm14, %v1830_v39, %v942_v6  ;;  %v596_v9 = vand.u32 2147483647, %v1875_v32  ;;  %v954_v13 = vmul.f32 %v953_v15, %v1834_v44  ;;  %v580_v27 = vsel %vm579_vm13, %v1861_v18, %v576_v0  ;;  %vm1023_vm14 = vmor %vm1021_vm4, %vm1022_vm9  ;;  %v384_v6 = vpop.f32.mrf.mxu0 }
  0xe4   : > { %v1019_v4 = vmul.f32 %v1421_v29, %v1018_v63  ;;  %v947_v23 = vsel %vm945_vm0, %v946_v8, %v944_v62  ;;  %v778_v28 = vmul.f32 0.1, %v770_v59  ;;  %v1033_v57 = vsub.f32 1.0, %v1032_v34 }
  0xe5   : > { %v1931_v47 = vmax.f32 %v947_v23, 1e-12  ;;  %v585_v40 = vsel %vm1881_vm1, %v584_v37, %v580_v27  ;;  %v956_v39 = vsel %vm955_vm3, %v1834_v44, %v954_v13  ;;  %v588_v8 = vmul.f32 %v1910_v17, %v1875_v32 }
  0xe6   : > { %v1020_v2 = vadd.f32 %v1421_v29, %v1019_v4  ;;  %644 = vst [vmem:[#allocation1 + $0x24] sm:$0xff] %v585_v40  ;;  %v598_v18 = vand.u32 2147483648, %v1875_v32  ;;  %1426 = vlog2.f32 %v739_v12  ;;  %v1034_v31 = vmul.f32 %v1423_v43, %v1033_v57 }
  0xe7   : > { %vm1037_vm15 = vweird.f32 %v1423_v43  ;;  %1428 = vrcp.f32 %v1931_v47  ;;  %786 = vst [vmem:[%s1610_s30 + $0x20] sm:$0x70] %v778_v28  ;;  %v1057_v61 = vand.u32 2147483648, %v1931_v47  ;;  %v959_v37 = vsel %vm957_vm6, %v958_v20, %v956_v39 }
  0xe8   : > { %v1024_v1 = vsel %vm1023_vm14, %v1421_v29, %v1020_v2  ;;  %vm592_vm0 = vweird.f32 %v1875_v32  ;;  %v1035_v29 = vadd.f32 %v1423_v43, %v1034_v31  ;;  %v1956_v35 = vmax.f32 %v959_v37, 1e-12  ;;  %vm1038_vm1 = vmor %vm1036_vm8, %vm1037_vm15 }
  0xe9   : > { %v1029_v55 = vsel %vm1894_vm5, %v1028_v60, %v1024_v1  ;;  %v1055_v51 = vand.u32 2147483647, %v1931_v47  ;;  %v589_v52 = vsub.f32 1.0, %v588_v8  ;;  %vm1961_vm2 = vcmp.eq.f32.partialorder %v596_v9, 8.507059e+37 }
  0xea   : > { %v1136_v46 = vmul.f32 %v1029_v55, %v1600_v24  ;;  %v1144_v50 = vmul.f32 %v1029_v55, %v1635_v48  ;;  %v742_v44 = vmul.f32 -0.5, %v1877_v33  ;;  %v1039_v20 = vsel %vm1038_vm1, %v1423_v43, %v1035_v29 }
  0xeb   : > { %1430 = vrcp.f32 %v1956_v35  ;;  %vm593_vm3 = vweird.f32 %v1910_v17  ;;  %v599_v24 = vor.u32 1.1754944e-38, %v598_v18  ;;  %v1044_v22 = vsel %vm1913_vm12, %v1043_v30, %v1039_v20 }
  0xec   : > { %1152 = vst [vmem:[%s1610_s30] sm:$0x80] %v1136_v46  ;;  %v1427_v48 = vpop.eup %1426  ;;  %vm1051_vm4 = vweird.f32 %v1931_v47  ;;  %v590_v56 = vmul.f32 %v1910_v17, %v589_v52  ;;  %v743_v45 = vadd.f32 1.0, %v742_v44  ;;  %v1137_v60 = vmul.f32 %v1044_v22, %v1603_v25  ;;  %vm594_vm6 = vmor %vm592_vm0, %vm593_vm3  ;;  %v407_v46 = vpop.f32.mrf.mxu1 }
  0xed   : > { %1160 = vst [vmem:[%s1610_s30 + $0x40] sm:$0x7] %v1144_v50  ;;  %v1429_v58 = vpop.eup %1428  ;;  %v1145_v5 = vmul.f32 %v1044_v22, %v1638_v49  ;;  %v1058_v54 = vor.u32 1.1754944e-38, %v1057_v61  ;;  %v1070_v63 = vand.u32 2147483647, %v1956_v35  ;;  %vm1978_vm5 = vcmp.eq.f32.partialorder %v1055_v51, 8.507059e+37 }
  0xee   : > { %v1047_v15 = vmul.f32 %v1429_v58, %v1931_v47  ;;  %v1072_v43 = vand.u32 2147483648, %v1956_v35  ;;  %v591_v30 = vadd.f32 %v1910_v17, %v590_v56  ;;  %v741_v0 = vmul.f32 0.6931472, %v1427_v48  ;;  %1153 = vst [vmem:[%s1610_s30 + $0x8] sm:$0x80] %v1137_v60 }
  0xef   : > { %v744_v25 = vmul.f32 %v1877_v33, %v743_v45  ;;  %v745_v49 = vand.u32 2147483647, %v1877_v33  ;;  %v500_v12 = vmul.f32 1.442695, %v486_v16  ;;  %v1994_v4 = vadd.f32 %v450_v14, %v1597_v21  ;;  %1161 = vst [vmem:[%s1610_s30 + $0x48] sm:$0x7] %v1145_v5 }
  0xf0   : > { %v1048_v34 = vsub.f32 1.0, %v1047_v15  ;;  %vm1066_vm7 = vweird.f32 %v1956_v35  ;;  %v595_v7 = vsel %vm594_vm6, %v1910_v17, %v591_v30  ;;  %v668_v32 = vand.u32 2147483647, %v1825_v26 }
  0xf1   : > { %v2001_v62 = vadd.f32 %v384_v6, %v1620_v36  ;;  %v1431_v9 = vpop.eup %1430  ;;  %v600_v33 = vsel %vm1961_vm2, %v599_v24, %v595_v7  ;;  %vm746_vm8 = vcmp.lt.f32.partialorder %v745_v49, 0.0004427343  ;;  %1432 = vpow2.f32 %v500_v12 }
  0xf2   : > { %v1327_v21 = vclamps-f32 %v1994_v4, 1.0  ;;  %v1049_v16 = vmul.f32 %v1429_v58, %v1048_v34  ;;  %vm1052_vm9 = vweird.f32 %v1429_v58  ;;  %v1062_v23 = vmul.f32 %v1431_v9, %v1956_v35  ;;  %645 = vst [vmem:[#allocation1 + $0x2d] sm:$0xff] %v600_v33 }
  0xf3   : > { %v747_v17 = vsel %vm746_vm8, %v744_v25, %v741_v0  ;;  %v1073_v13 = vor.u32 1.1754944e-38, %v1072_v43  ;;  %v676_v28 = vsub.f32 0.0, %v668_v32  ;;  %v487_v2 = vsub.f32 0.0, %v1994_v4  ;;  %vm1053_vm12 = vmor %vm1051_vm4, %vm1052_vm9  ;;  %v430_v0 = vpop.f32.mrf.mxu2 }
  0xf4   : > { %v771_v27 = vadd.f32 %v747_v17, %v659_v11  ;;  %479 = vst [vmem:[%s1610_s30 + $0x38] sm:$0x7] %v1327_v21  ;;  %v1050_v57 = vadd.f32 %v1429_v58, %v1049_v16  ;;  %v1063_v40 = vsub.f32 1.0, %v1062_v23  ;;  %v669_v39 = vand.u32 2147483647, %v1994_v4 }
  0xf5   : > { %v794_v8 = vmul.f32 %v1802_v38, %v1802_v38  ;;  %v690_v1 = vmul.f32 1.442695, %v676_v28  ;;  %v502_v31 = vmul.f32 1.442695, %v487_v2  ;;  %v802_v11 = vmul.f32 %v2001_v62, %v2001_v62 }
  0xf6   : > { %v779_v18 = vmul.f32 0.1, %v771_v27  ;;  %v1054_v55 = vsel %vm1053_vm12, %v1429_v58, %v1050_v57  ;;  %v1064_v61 = vmul.f32 %v1431_v9, %v1063_v40  ;;  %vm1067_vm13 = vweird.f32 %v1431_v9 }
  0xf7   : > { %v677_v37 = vsub.f32 0.0, %v669_v39  ;;  %v1433_v50 = vpop.eup %1432  ;;  %v1059_v29 = vsel %vm1978_vm5, %v1058_v54, %v1054_v55  ;;  %1434 = vpow2.f32 %v690_v1  ;;  %v835_v47 = vrot.slane %v794_v8, 7  ;;  %vm1068_vm14 = vmor %vm1066_vm7, %vm1067_vm13 }
  0xf8   : > { %787 = vst [vmem:[%s1610_s30 + $0x28] sm:$0x70] %v779_v18  ;;  %v836_v51 = vrot.slane %v802_v11, 7  ;;  %v1138_v52 = vmul.f32 %v1059_v29, %v1623_v41  ;;  %v1146_v53 = vmul.f32 %v1059_v29, %v1777_v10  ;;  %v1065_v44 = vadd.f32 %v1431_v9, %v1064_v61 }
  0xf9   : > { %v2023_v20 = vadd.f32 1.0, %v1433_v50  ;;  %1436 = vpow2.f32 %v502_v31  ;;  %v692_v24 = vmul.f32 1.442695, %v677_v37  ;;  %v2029_v22 = vadd.f32 %v407_v46, %v1620_v36 }
  0xfa   : > { %v837_v48 = vsel %vm822_vm10, %v835_v47, %v836_v51  ;;  %1154 = vst [vmem:[%s1610_s30 + $0x10] sm:$0x80] %v1138_v52  ;;  %v1069_v56 = vsel %vm1068_vm14, %v1431_v9, %v1065_v44  ;;  %vm1071_vm15 = vcmp.eq.f32.partialorder %v1070_v63, 8.507059e+37  ;;  %v795_v35 = vmul.f32 %v1815_v3, %v1815_v3 }
  0xfb   : > { %1438 = vrcp.f32 %v2023_v20  ;;  %1162 = vst [vmem:[%s1610_s30 + $0x50] sm:$0x7] %v1146_v53  ;;  %v1074_v41 = vsel %vm1071_vm15, %v1073_v13, %v1069_v56  ;;  %v884_v10 = vsel %vm855_vm11, %v837_v48, 0.0  ;;  %v611_v5 = vand.u32 2147483647, %v2023_v20 }
  0xfc   : > { %1440 = vpow2.f32 %v692_v24  ;;  %v1139_v45 = vmul.f32 %v1074_v41, %v1626_v42  ;;  %v1147_v14 = vmul.f32 %v1074_v41, %v1783_v19  ;;  %v885_v58 = vrot.slane %v884_v10, 4 }
  0xfd   : > { %v1435_v60 = vpop.eup %1434  ;;  %1442 = vtanh.f32 %v2001_v62  ;;  %v803_v54 = vmul.f32 %v2029_v22, %v2029_v22  ;;  %v613_v63 = vand.u32 2147483648, %v2023_v20  ;;  %v660_v19 = vmax.f32 %v1825_v26, 0.0 }
  0xfe   : > { %1155 = vst [vmem:[%s1610_s30 + $0x18] sm:$0x80] %v1139_v45  ;;  %v748_v6 = vadd.f32 1.0, %v1435_v60  ;;  %v751_v15 = vmul.f32 -0.5, %v1435_v60  ;;  %v886_v42 = vadd.f32 %v885_v58, %v884_v10  ;;  %v661_v43 = vmax.f32 %v1994_v4, 0.0 }
  0xff   : > { %v1437_v59 = vpop.eup %1436  ;;  %1163 = vst [vmem:[%s1610_s30 + $0x58] sm:$0x7] %v1147_v14  ;;  %v839_v30 = vrot.slane %v803_v54, 7  ;;  %1444 = vtanh.f32 %v2029_v22  ;;  %vm607_vm0 = vweird.f32 %v2023_v20  ;;  %v754_v49 = vand.u32 2147483647, %v1435_v60 }
 0x100   : > { %1446 = vlog2.f32 %v748_v6  ;;  %v2052_v12 = vadd.f32 1.0, %v1437_v59  ;;  %vm2055_vm1 = vcmp.eq.f32.partialorder %v611_v5, 8.507059e+37  ;;  %v752_v9 = vadd.f32 1.0, %v751_v15  ;;  %v453_v5 = vpop.f32.mrf.mxu3 }
 0x101   : > { %v1439_v25 = vpop.eup %1438  ;;  %v887_v33 = vrot.slane %v886_v42, 2  ;;  %v838_v21 = vrot.slane %v795_v35, 7  ;;  %v614_v16 = vor.u32 1.1754944e-38, %v613_v63  ;;  %v2061_v23 = vadd.f32 %v430_v0, %v1620_v36 }
 0x102   : > { %v1441_v34 = vpop.eup %1440  ;;  %v603_v7 = vmul.f32 %v1439_v25, %v2023_v20  ;;  %1448 = vrcp.f32 %v2052_v12  ;;  %v796_v17 = vmul.f32 %v1825_v26, %v1825_v26  ;;  %vm608_vm2 = vweird.f32 %v1439_v25 }
 0x103   : > { %v1443_v13 = vpop.eup %1442  ;;  %v757_v28 = vadd.f32 1.0, %v1441_v34  ;;  %v760_v2 = vmul.f32 -0.5, %v1441_v34  ;;  %v840_v57 = vsel %vm822_vm10, %v838_v21, %v839_v30  ;;  %vm2066_vm3 = vcmp.lt.f32.partialorder %v754_v49, 0.0004427343  ;;  %vm609_vm5 = vmor %vm607_vm0, %vm608_vm2 }
 0x104   : > { %v604_v27 = vsub.f32 1.0, %v603_v7  ;;  %v888_v39 = vadd.f32 %v887_v33, %v886_v42  ;;  %v1180_v8 = vmul.f32 0.5, %v1443_v13  ;;  %v753_v31 = vmul.f32 %v1435_v60, %v752_v9 }
 0x105   : > { %v1445_v18 = vpop.eup %1444  ;;  %1450 = vlog2.f32 %v757_v28  ;;  %v763_v11 = vand.u32 2147483647, %v1441_v34  ;;  %v761_v61 = vadd.f32 1.0, %v760_v2  ;;  %v891_v50 = vsel %vm855_vm11, %v840_v57, 0.0 }
 0x106   : > { %v605_v1 = vmul.f32 %v1439_v25, %v604_v27  ;;  %v1447_v55 = vpop.eup %1446  ;;  %v889_v37 = vrot.slane %v888_v39, 1  ;;  %v1188_v46 = vadd.f32 0.5, %v1180_v8  ;;  %vm622_vm4 = vweird.f32 %v2052_v12 }
 0x107   : > { %v750_v47 = vmul.f32 0.6931472, %v1447_v55  ;;  %v626_v51 = vand.u32 2147483647, %v2052_v12  ;;  %v892_v52 = vrot.slane %v891_v50, 4  ;;  %v628_v44 = vand.u32 2147483648, %v2052_v12 }
 0x108   : > { %v606_v29 = vadd.f32 %v1439_v25, %v605_v1  ;;  %v1449_v53 = vpop.eup %1448  ;;  %v2077_v24 = vadd.f32 %v889_v37, %v888_v39  ;;  %1196 = vst [vmem:[%s1610_s30 + $0x60] sm:$0x38] %v1188_v46  ;;  %v1181_v48 = vmul.f32 0.5, %v1445_v18  ;;  %v804_v56 = vmul.f32 %v2061_v23, %v2061_v23 }
 0x109   : > { %v756_v10 = vsel %vm2066_vm3, %v753_v31, %v750_v47  ;;  %v618_v45 = vmul.f32 %v1449_v53, %v2052_v12  ;;  %vm2085_vm6 = vcmp.lt.f32.partialorder %v763_v11, 0.0004427343  ;;  %v762_v60 = vmul.f32 %v1441_v34, %v761_v61 }
 0x10a   : > { %v610_v41 = vsel %vm609_vm5, %v1439_v25, %v606_v29  ;;  %v772_v58 = vadd.f32 %v756_v10, %v660_v19  ;;  %1452 = vrsqrt.f32 %v2077_v24  ;;  %vm623_vm7 = vweird.f32 %v1449_v53 }
 0x10b   : > { %v615_v20 = vsel %vm2055_vm1, %v614_v16, %v610_v41  ;;  %v1451_v35 = vpop.eup %1450  ;;  %v619_v54 = vsub.f32 1.0, %v618_v45  ;;  %v893_v63 = vadd.f32 %v892_v52, %v891_v50  ;;  %v841_v6 = vrot.slane %v796_v17, 7  ;;  %vm624_vm9 = vmor %vm622_vm4, %vm623_vm7 }
 0x10c   : > { %646 = vst [vmem:[#allocation1 + $0x36] sm:$0xff] %v615_v20  ;;  %v780_v15 = vmul.f32 0.1, %v772_v58  ;;  %v759_v42 = vmul.f32 0.6931472, %v1451_v35  ;;  %v1189_v59 = vadd.f32 0.5, %v1181_v48  ;;  %1454 = vtanh.f32 %v2061_v23 }
 0x10d   : > { %v842_v30 = vrot.slane %v804_v56, 7  ;;  %v620_v0 = vmul.f32 %v1449_v53, %v619_v54  ;;  %v894_v25 = vrot.slane %v893_v63, 2  ;;  %v2094_v19 = vadd.f32 %v453_v5, %v1620_v36 }
 0x10e   : > { %788 = vst [vmem:[%s1610_s30 + $0x30] sm:$0x70] %v780_v15  ;;  %vm2097_vm8 = vcmp.eq.f32.partialorder %v626_v51, 8.507059e+37  ;;  %v765_v34 = vsel %vm2085_vm6, %v762_v60, %v759_v42  ;;  %v797_v32 = vmul.f32 %v1994_v4, %v1994_v4  ;;  %v629_v17 = vor.u32 1.1754944e-38, %v628_v44 }
 0x10f   : > { %v843_v7 = vsel %vm822_vm10, %v841_v6, %v842_v30  ;;  %v621_v9 = vadd.f32 %v1449_v53, %v620_v0  ;;  %v773_v33 = vadd.f32 %v765_v34, %v661_v43  ;;  %v895_v21 = vadd.f32 %v894_v25, %v893_v63  ;;  %1197 = vst [vmem:[%s1610_s30 + $0x68] sm:$0x38] %v1189_v59 }
 0x110   : > { %v898_v36 = vsel %vm855_vm11, %v843_v7, 0.0  ;;  %v1453_v16 = vpop.eup %1452  ;;  %v805_v27 = vmul.f32 %v2094_v19, %v2094_v19  ;;  %1456 = vtanh.f32 %v2094_v19  ;;  %v844_v8 = vrot.slane %v797_v32, 7 }
 0x111   : > { %v899_v13 = vrot.slane %v898_v36, 4  ;;  %v625_v28 = vsel %vm624_vm9, %v1449_v53, %v621_v9  ;;  %v781_v2 = vmul.f32 0.1, %v773_v33  ;;  %v961_v43 = vmul.f32 %v1453_v16, %v2077_v24 }
 0x112   : > { %v896_v57 = vrot.slane %v895_v21, 1  ;;  %v630_v40 = vsel %vm2097_vm8, %v629_v17, %v625_v28  ;;  %v845_v12 = vrot.slane %v805_v27, 7  ;;  %v1455_v18 = vpop.eup %1454  ;;  %v970_v60 = vand.u32 2147483648, %v2077_v24 }
 0x113   : > { %v900_v39 = vadd.f32 %v899_v13, %v898_v36  ;;  %647 = vst [vmem:[#allocation1 + $0x3f] sm:$0xff] %v630_v40  ;;  %v962_v1 = vmul.f32 %v1453_v16, %v961_v43  ;;  %v1182_v55 = vmul.f32 0.5, %v1455_v18 }
 0x114   : > { %v897_v31 = vadd.f32 %v896_v57, %v895_v21  ;;  %789 = vst [vmem:[%s1610_s30 + $0x38] sm:$0x70] %v781_v2  ;;  %v846_v61 = vsel %vm822_vm10, %v844_v8, %v845_v12  ;;  %vm967_vm10 = vcmp.eq.f32.partialorder %v2077_v24, inf }
 0x115   : > { %v901_v11 = vrot.slane %v900_v39, 2  ;;  %v963_v37 = vmul.f32 0.5, %v962_v1  ;;  %v1190_v29 = vadd.f32 0.5, %v1182_v55  ;;  %v905_v47 = vsel %vm855_vm11, %v846_v61, 0.0 }
 0x116   : > { %1458 = vrsqrt.f32 %v897_v31  ;;  %v1457_v46 = vpop.eup %1456  ;;  %v906_v52 = vrot.slane %v905_v47, 4  ;;  %vm969_vm11 = vcmp.eq.f32.partialorder %v2077_v24, 0.0  ;;  %vm979_vm12 = vcmp.eq.f32.partialorder %v897_v31, inf }
 0x117   : > { %v902_v50 = vadd.f32 %v901_v11, %v900_v39  ;;  %v964_v51 = vsub.f32 1.5, %v963_v37  ;;  %v1183_v53 = vmul.f32 0.5, %v1457_v46  ;;  %1198 = vst [vmem:[%s1610_s30 + $0x70] sm:$0x38] %v1190_v29  ;;  %vm981_vm13 = vcmp.eq.f32.partialorder %v897_v31, 0.0 }
 0x118   : > { %v907_v56 = vadd.f32 %v906_v52, %v905_v47 }
 0x119   : > { %v903_v44 = vrot.slane %v902_v50, 1  ;;  %v965_v48 = vmul.f32 %v1453_v16, %v964_v51  ;;  %v1191_v41 = vadd.f32 0.5, %v1183_v53 }
 0x11a   : > { %v649_v10 = vld [vmem:[#allocation1 + $0x3] ss:$9 sm:$0xff]  ;;  %v908_v58 = vrot.slane %v907_v56, 2 }
 0x11b   : > { %v904_v45 = vadd.f32 %v903_v44, %v902_v50  ;;  %1328 = vst [vmem:[%s1610_s30 + $0x3] ss:$8 sm:$0xf] %v649_v10  ;;  %v966_v20 = vmul.f32 %v965_v48, %v2077_v24 }
 0x11c   : > { %v1459_v14 = vpop.eup %1458  ;;  %1329 = vst [vmem:[%s1610_s30 + $0x3] ss:$8 sm:$0xf0] %v649_v10  ;;  %v909_v54 = vadd.f32 %v908_v58, %v907_v56 }
 0x11d   : > { %v973_v5 = vmul.f32 %v1459_v14, %v897_v31  ;;  %1460 = vrsqrt.f32 %v904_v45  ;;  %v968_v35 = vsel %vm967_vm10, %v2077_v24, %v966_v20  ;;  %1199 = vst [vmem:[%s1610_s30 + $0x78] sm:$0x38] %v1191_v41  ;;  %v982_v24 = vand.u32 2147483648, %v897_v31 }
 0x11e   : > { %v971_v63 = vsel %vm969_vm11, %v970_v60, %v968_v35  ;;  %v910_v42 = vrot.slane %v909_v54, 1  ;;  %vm991_vm0 = vcmp.eq.f32.partialorder %v904_v45, inf  ;;  %v994_v1 = vand.u32 2147483648, %v904_v45 }
 0x11f   : > { %v974_v6 = vmul.f32 %v1459_v14, %v973_v5  ;;  %v1012_v15 = vmax.f32 %v971_v63, 1e-12  ;;  %vm993_vm2 = vcmp.eq.f32.partialorder %v904_v45, 0.0 }
 0x120   : > { %v2131_v25 = vadd.f32 %v910_v42, %v909_v54 }
 0x121   : > { %v975_v59 = vmul.f32 0.5, %v974_v6  ;;  %1462 = vrcp.f32 %v1012_v15  ;;  %v1087_v2 = vand.u32 2147483648, %v1012_v15  ;;  %v1085_v39 = vand.u32 2147483647, %v1012_v15 }
 0x122   : > { %1464 = vrsqrt.f32 %v2131_v25  ;;  %vm1081_vm15 = vweird.f32 %v1012_v15  ;;  %vm1003_vm4 = vcmp.eq.f32.partialorder %v2131_v25, inf  ;;  %vm1005_vm6 = vcmp.eq.f32.partialorder %v2131_v25, 0.0 }
 0x123   : > { %v1461_v30 = vpop.eup %1460  ;;  %v976_v0 = vsub.f32 1.5, %v975_v59  ;;  %vm1086_vm3 = vcmp.eq.f32.partialorder %v1085_v39, 8.507059e+37 }
 0x124   : > { %v985_v49 = vmul.f32 %v1461_v30, %v904_v45 }
 0x125   : > { %v977_v34 = vmul.f32 %v1459_v14, %v976_v0  ;;  %v1006_v14 = vand.u32 2147483648, %v2131_v25 }
 0x126   : > { %v986_v7 = vmul.f32 %v1461_v30, %v985_v49 }
 0x127   : > { %v978_v32 = vmul.f32 %v977_v34, %v897_v31  ;;  %v1463_v9 = vpop.eup %1462 }
 0x128   : > { %v987_v33 = vmul.f32 0.5, %v986_v7  ;;  %v1077_v21 = vmul.f32 %v1463_v9, %v1012_v15  ;;  %v1465_v13 = vpop.eup %1464  ;;  %vm1082_vm14 = vweird.f32 %v1463_v9 }
 0x129   : > { %v980_v36 = vsel %vm979_vm12, %v897_v31, %v978_v32  ;;  %v997_v57 = vmul.f32 %v1465_v13, %v2131_v25  ;;  %vm1083_vm1 = vmor %vm1081_vm15, %vm1082_vm14  ;;  %v1088_v31 = vor.u32 1.1754944e-38, %v1087_v2 }
 0x12a   : > { %v983_v16 = vsel %vm981_vm13, %v982_v24, %v980_v36  ;;  %v988_v17 = vsub.f32 1.5, %v987_v33  ;;  %v1078_v27 = vsub.f32 1.0, %v1077_v21 }
 0x12b   : > { %v1013_v28 = vmax.f32 %v983_v16, 1e-12  ;;  %v998_v12 = vmul.f32 %v1465_v13, %v997_v57 }
 0x12c   : > { %v989_v43 = vmul.f32 %v1461_v30, %v988_v17  ;;  %v1079_v40 = vmul.f32 %v1463_v9, %v1078_v27 }
 0x12d   : > { %1466 = vrcp.f32 %v1013_v28  ;;  %v999_v55 = vmul.f32 0.5, %v998_v12  ;;  %v1102_v56 = vand.u32 2147483648, %v1013_v28  ;;  %vm1096_vm7 = vweird.f32 %v1013_v28 }
 0x12e   : > { %v990_v8 = vmul.f32 %v989_v43, %v904_v45  ;;  %v1080_v18 = vadd.f32 %v1463_v9, %v1079_v40 }
 0x12f   : > { %v1000_v29 = vsub.f32 1.5, %v999_v55  ;;  %v1103_v60 = vor.u32 1.1754944e-38, %v1102_v56 }
 0x130   : > { %v992_v11 = vsel %vm991_vm0, %v904_v45, %v990_v8  ;;  %v1084_v61 = vsel %vm1083_vm1, %v1463_v9, %v1080_v18  ;;  %v1100_v45 = vand.u32 2147483647, %v1013_v28 }
 0x131   : > { %v995_v37 = vsel %vm993_vm2, %v994_v1, %v992_v11  ;;  %v1089_v46 = vsel %vm1086_vm3, %v1088_v31, %v1084_v61  ;;  %v1001_v44 = vmul.f32 %v1465_v13, %v1000_v29 }
 0x132   : > { %v1014_v50 = vmax.f32 %v995_v37, 1e-12  ;;  %v1140_v51 = vmul.f32 %v1089_v46, %v1802_v38  ;;  %v1148_v52 = vmul.f32 %v1089_v46, %v2001_v62  ;;  %vm1101_vm9 = vcmp.eq.f32.partialorder %v1100_v45, 8.507059e+37 }
 0x133   : > { %v1467_v47 = vpop.eup %1466  ;;  %v1002_v41 = vmul.f32 %v1001_v44, %v2131_v25 }
 0x134   : > { %v1092_v53 = vmul.f32 %v1467_v47, %v1013_v28  ;;  %1468 = vrcp.f32 %v1014_v50  ;;  %1156 = vst [vmem:[%s1610_s30 + $0x20] sm:$0x80] %v1140_v51  ;;  %vm1097_vm5 = vweird.f32 %v1467_v47  ;;  %v1117_v59 = vand.u32 2147483648, %v1014_v50 }
 0x135   : > { %1164 = vst [vmem:[%s1610_s30 + $0x60] sm:$0x7] %v1148_v52  ;;  %v1004_v38 = vsel %vm1003_vm4, %v2131_v25, %v1002_v41  ;;  %vm1098_vm8 = vmor %vm1096_vm7, %vm1097_vm5  ;;  %v1115_v0 = vand.u32 2147483647, %v1014_v50  ;;  %vm1111_vm11 = vweird.f32 %v1014_v50 }
 0x136   : > { %v1093_v48 = vsub.f32 1.0, %v1092_v53  ;;  %v1007_v58 = vsel %vm1005_vm6, %v1006_v14, %v1004_v38  ;;  %v1118_v49 = vor.u32 1.1754944e-38, %v1117_v59 }
 0x137   : > { %v1015_v35 = vmax.f32 %v1007_v58, 1e-12  ;;  %vm1116_vm13 = vcmp.eq.f32.partialorder %v1115_v0, 8.507059e+37 }
 0x138   : > { %v1094_v10 = vmul.f32 %v1467_v47, %v1093_v48 }
 0x139   : > { %1470 = vrcp.f32 %v1015_v35  ;;  %v1132_v33 = vand.u32 2147483648, %v1015_v35  ;;  %v1130_v36 = vand.u32 2147483647, %v1015_v35  ;;  %vm1126_vm15 = vweird.f32 %v1015_v35 }
 0x13a   : > { %v1469_v62 = vpop.eup %1468  ;;  %v1095_v20 = vadd.f32 %v1467_v47, %v1094_v10 }
 0x13b   : > { %v1107_v5 = vmul.f32 %v1469_v62, %v1014_v50  ;;  %vm1112_vm10 = vweird.f32 %v1469_v62  ;;  %v1133_v17 = vor.u32 1.1754944e-38, %v1132_v33  ;;  %vm1131_vm1 = vcmp.eq.f32.partialorder %v1130_v36, 8.507059e+37 }
 0x13c   : > { %v1099_v54 = vsel %vm1098_vm8, %v1467_v47, %v1095_v20  ;;  %vm1113_vm12 = vmor %vm1111_vm11, %vm1112_vm10 }
 0x13d   : > { %v1104_v63 = vsel %vm1101_vm9, %v1103_v60, %v1099_v54  ;;  %v1108_v6 = vsub.f32 1.0, %v1107_v5 }
 0x13e   : > { %v1141_v15 = vmul.f32 %v1104_v63, %v1815_v3  ;;  %v1149_v42 = vmul.f32 %v1104_v63, %v2029_v22 }
 0x13f   : > { %v1109_v30 = vmul.f32 %v1469_v62, %v1108_v6  ;;  %v1471_v34 = vpop.eup %1470 }
 0x140   : > { %1157 = vst [vmem:[%s1610_s30 + $0x28] sm:$0x80] %v1141_v15  ;;  %v1122_v9 = vmul.f32 %v1471_v34, %v1015_v35  ;;  %vm1127_vm14 = vweird.f32 %v1471_v34 }
 0x141   : > { %1165 = vst [vmem:[%s1610_s30 + $0x68] sm:$0x7] %v1149_v42  ;;  %v1110_v25 = vadd.f32 %v1469_v62, %v1109_v30  ;;  %vm1128_vm0 = vmor %vm1126_vm15, %vm1127_vm14 }
 0x142   : > { %v1123_v24 = vsub.f32 1.0, %v1122_v9 }
 0x143   : > { %v1114_v7 = vsel %vm1113_vm12, %v1469_v62, %v1110_v25 }
 0x144   : > { %v1119_v32 = vsel %vm1116_vm13, %v1118_v49, %v1114_v7  ;;  %v1124_v21 = vmul.f32 %v1471_v34, %v1123_v24 }
 0x145   : > { %v1142_v3 = vmul.f32 %v1119_v32, %v1825_v26  ;;  %v1150_v22 = vmul.f32 %v1119_v32, %v2061_v23 }
 0x146   : > { %v1125_v16 = vadd.f32 %v1471_v34, %v1124_v21 }
 0x147   : > { %1158 = vst [vmem:[%s1610_s30 + $0x30] sm:$0x80] %v1142_v3 }
 0x148   : > { %1166 = vst [vmem:[%s1610_s30 + $0x70] sm:$0x7] %v1150_v22  ;;  %v1129_v13 = vsel %vm1128_vm0, %v1471_v34, %v1125_v16 }
 0x149   : > { %v1134_v27 = vsel %vm1131_vm1, %v1133_v17, %v1129_v13 }
 0x14a   : > { %v1143_v26 = vmul.f32 %v1134_v27, %v1994_v4  ;;  %v1151_v23 = vmul.f32 %v1134_v27, %v2094_v19 }
 0x14c   : > { %1159 = vst [vmem:[%s1610_s30 + $0x38] sm:$0x80] %v1143_v26 }
 0x14d   : > { %1167 = vst [vmem:[%s1610_s30 + $0x78] sm:$0x7] %v1151_v23 }
 0x14e PF: > { %s13_s14 = sadd.s32 1, %s1494_s14   ;;  %s2203_s12 = smov %s1490_s13 }
 0x14f   : > { %p10_p5 = scmp.ge.s32.totalorder %s13_s14, 4   ;;  %s2204_s13 = smov %s2206_s15 }
 0x151   :  { %12 = sbr.rel (!%p10_p5) target bundleno = 2 (0x2), region = 64 }

</bundles_post_ra>
